<compile_context>
chip_gen: v5e
topology: v5e:2x2
jax: 0.10.0
libtpu: 0.0.40
codegen_flags: <defaults>
</compile_context>

<pallas_src>
import functools

import jax
import jax.numpy as jnp
from jax.experimental import pallas as pl
from jax.experimental.pallas import tpu as pltpu


# ---------------------------------------------------------------------------
# Kernel 1: Q/K/V projections, head-major, K pre-transposed.  grid = (B,)
# ---------------------------------------------------------------------------
def qkv_proj_kernel(xq_ref, xkt_ref, xv_ref, wq_ref, wk_ref, wv_ref,
                    qh_ref, kt_ref, vh_ref, *, n_heads, d_k, d_v):
    # xq: [Sq, D] bf16   xkt: [D, Sk] bf16 (k transposed)   xv: [Sk, D] bf16
    qp = jnp.dot(xq_ref[0], wq_ref[...], preferred_element_type=jnp.float32)    # [Sq, H*dk]
    # nn.Linear: K = Xk @ Wk^T  =>  K^T = Wk @ Xk^T  (Wk kept in original [out,in] layout)
    ktp = jnp.dot(wk_ref[...], xkt_ref[0], preferred_element_type=jnp.float32)  # [H*dk, Sk]
    vp = jnp.dot(xv_ref[0], wv_ref[...], preferred_element_type=jnp.float32)    # [Sk, H*dv]
    qb = qp.astype(jnp.bfloat16)
    ktb = ktp.astype(jnp.bfloat16)
    vb = vp.astype(jnp.bfloat16)
    for h in range(n_heads):   # static unroll; once per batch element (amortised)
        qh_ref[0, h] = qb[:, h * d_k:(h + 1) * d_k]       # [Sq, dk]
        kt_ref[0, h] = ktb[h * d_k:(h + 1) * d_k, :]      # [dk, Sk]  (sublane slice)
        vh_ref[0, h] = vb[:, h * d_v:(h + 1) * d_v]       # [Sk, dv]


# ---------------------------------------------------------------------------
# Kernel 2: attention core + output projection + residual + LayerNorm.
# grid = (B, n_query_tiles), both parallel.
# ---------------------------------------------------------------------------
def mha_core_kernel(*refs, masked, return_attn, ln_eps):
    i = 0
    qres_ref = refs[i]; i += 1          # [1, tq, D]  f32 residual
    qh_ref = refs[i]; i += 1            # [1, H, tq, dk] bf16 (1/sqrt(dk) folded in)
    kt_ref = refs[i]; i += 1            # [1, H, dk, Sk] bf16 (pre-transposed K)
    vh_ref = refs[i]; i += 1            # [1, H, Sk, dv] bf16
    mask_ref = None
    if masked:
        mask_ref = refs[i]; i += 1      # [1, tq, Sk] int8
    wfc_ref = refs[i]; i += 1           # [H, dv, D] bf16
    gamma_ref = refs[i]; i += 1         # [1, D] f32
    beta_ref = refs[i]; i += 1          # [1, D] f32
    out_ref = refs[i]; i += 1           # [1, tq, D] f32
    attn_ref = refs[i] if return_attn else None

    # ---- attention scores: all heads batched, MXU-native NN matmul ----
    logits = jnp.einsum("hqd,hdk->hqk", qh_ref[0], kt_ref[0],
                        preferred_element_type=jnp.float32)          # [H, tq, Sk] f32
    if masked:
        bias = jnp.where(mask_ref[0] == 0, jnp.float32(-1e9), jnp.float32(0.0))
        logits = logits + bias[None, :, :]

    # ---- softmax ----
    m = jnp.max(logits, axis=-1, keepdims=True)
    e = jnp.exp(logits - m)
    denom = jnp.sum(e, axis=-1, keepdims=True)
    if return_attn and attn_ref.dtype == jnp.float32:
        inv = 1.0 / denom                        # exact reciprocal for f32 attn parity
    else:
        inv = pl.reciprocal(denom, approx=True)  # EUP slot (~free); error << bf16 ulp
    p = e * inv                                  # [H, tq, Sk] f32
    p_b = p.astype(jnp.bfloat16)                 # single bf16 copy shared by PV + output
    if return_attn:
        if attn_ref.dtype == p_b.dtype:
            attn_ref[0] = p_b
        else:
            attn_ref[0] = p.astype(attn_ref.dtype)

    # ---- context + output projection (no concat slab, no masked 64-lane stores) ----
    ctx = jnp.einsum("hqk,hkd->hqd", p_b, vh_ref[0],
                     preferred_element_type=jnp.float32)              # [H, tq, dv]
    yh = jnp.einsum("hqd,hdD->hqD", ctx.astype(jnp.bfloat16), wfc_ref[...],
                    preferred_element_type=jnp.float32)               # [H, tq, D]
    y = jnp.sum(yh, axis=0) + qres_ref[0]                             # residual (f32)

    # ---- LayerNorm(eps=1e-6) ----
    mean = jnp.mean(y, axis=-1, keepdims=True)
    var = jnp.mean((y - mean) ** 2, axis=-1, keepdims=True)
    yn = (y - mean) * jax.lax.rsqrt(var + ln_eps)
    out_ref[0] = (yn * gamma_ref[...] + beta_ref[...]).astype(out_ref.dtype)


# ---------------------------------------------------------------------------
# Helpers
# ---------------------------------------------------------------------------
def _choose_q_tile(S, max_tile):
    """Largest multiple-of-8 divisor of S that is <= max_tile (or S itself)."""
    if S <= max_tile:
        return S
    for t in range(max_tile, 7, -1):
        if t % 8 == 0 and S % t == 0:
            return t
    return S


def _tpu_budget():
    """Generation-gated (vmem_limit_bytes, default query tile)."""
    cap = 128 * 1024 * 1024
    try:
        cap = int(pltpu.get_tpu_info().vmem_capacity_bytes)
    except Exception:
        pass
    limit = max(32 * 1024 * 1024, min((cap * 3) // 4, 100 * 1024 * 1024))
    tile = 256 if cap >= 100 * 1024 * 1024 else 128   # v5e/v6e: 96MiB/256, v7x: 48MiB/128
    return limit, tile


# ---------------------------------------------------------------------------
# Wrapper
# ---------------------------------------------------------------------------
def multi_head_attention(q, k, v, attn_mask, params, *, n_heads, d_k, d_v,
                         attn_dtype=jnp.bfloat16, return_attn=True,
                         q_tile=None, ln_eps=1e-6):
    B, Sq, D = q.shape
    Sk = k.shape[1]
    scale = 1.0 / (float(d_k) ** 0.5)

    vmem_limit, default_tile = _tpu_budget()
    if q_tile is None:
        q_tile = default_tile
    tq = _choose_q_tile(Sq, q_tile)
    n_qt = Sq // tq

    # nn.Linear stores weight as [out, in].  Scale 1/sqrt(d_k) is folded into Wq.
    wq = (params["w_qs"].astype(jnp.float32).T * scale).astype(jnp.bfloat16)   # [D, H*dk]
    wk = params["w_ks"].astype(jnp.bfloat16)                                   # [H*dk, D] (kept [out,in])
    wv = params["w_vs"].astype(jnp.float32).T.astype(jnp.bfloat16)             # [D, H*dv]
    wfc = params["fc"].astype(jnp.float32).T.reshape(
        n_heads * d_v, D).reshape(n_heads, d_v, D).astype(jnp.bfloat16)        # [H, dv, D]
    gamma = params["ln_gamma"].reshape(1, D).astype(jnp.float32)
    beta = params["ln_beta"].reshape(1, D).astype(jnp.float32)

    # bf16 activations into the projection kernel (the kernel would cast anyway).
    xq = q.astype(jnp.bfloat16)
    xkt = jnp.swapaxes(k, 1, 2).astype(jnp.bfloat16)       # [B, D, Sk]
    xv = v.astype(jnp.bfloat16)

    # ---------------- pass 1: head-major Q / K^T / V projections ----------------
    qh, kt, vh = pl.pallas_call(
        functools.partial(qkv_proj_kernel, n_heads=n_heads, d_k=d_k, d_v=d_v),
        out_shape=(
            jax.ShapeDtypeStruct((B, n_heads, Sq, d_k), jnp.bfloat16),
            jax.ShapeDtypeStruct((B, n_heads, d_k, Sk), jnp.bfloat16),
            jax.ShapeDtypeStruct((B, n_heads, Sk, d_v), jnp.bfloat16),
        ),
        grid=(B,),
        in_specs=[
            pl.BlockSpec((1, Sq, D), lambda b: (b, 0, 0)),
            pl.BlockSpec((1, D, Sk), lambda b: (b, 0, 0)),
            pl.BlockSpec((1, Sk, D), lambda b: (b, 0, 0)),
            pl.BlockSpec((D, n_heads * d_k), lambda b: (0, 0)),
            pl.BlockSpec((n_heads * d_k, D), lambda b: (0, 0)),
            pl.BlockSpec((D, n_heads * d_v), lambda b: (0, 0)),
        ],
        out_specs=(
            pl.BlockSpec((1, n_heads, Sq, d_k), lambda b: (b, 0, 0, 0)),
            pl.BlockSpec((1, n_heads, d_k, Sk), lambda b: (b, 0, 0, 0)),
            pl.BlockSpec((1, n_heads, Sk, d_v), lambda b: (b, 0, 0, 0)),
        ),
        compiler_params=pltpu.CompilerParams(
            dimension_semantics=("parallel",),
            vmem_limit_bytes=vmem_limit,
        ),
    )(xq, xkt, xv, wq, wk, wv)

    # ---------------- pass 2: attention + fc + residual + LayerNorm ----------------
    masked = attn_mask is not None
    args = [q.astype(jnp.float32), qh, kt, vh]
    in_specs = [
        pl.BlockSpec((1, tq, D), lambda b, t: (b, t, 0)),                # residual q (f32)
        pl.BlockSpec((1, n_heads, tq, d_k), lambda b, t: (b, 0, t, 0)),  # Qh tile
        pl.BlockSpec((1, n_heads, d_k, Sk), lambda b, t: (b, 0, 0, 0)),  # K^T (full seq)
        pl.BlockSpec((1, n_heads, Sk, d_v), lambda b, t: (b, 0, 0, 0)),  # Vh (full seq)
    ]
    if masked:
        mask = (attn_mask != 0).astype(jnp.int8)                         # 4x less DMA than f32
        args.append(mask)
        in_specs.append(pl.BlockSpec((1, tq, Sk), lambda b, t: (b, t, 0)))
    args += [wfc, gamma, beta]
    in_specs += [
        pl.BlockSpec((n_heads, d_v, D), lambda b, t: (0, 0, 0)),
        pl.BlockSpec((1, D), lambda b, t: (0, 0)),
        pl.BlockSpec((1, D), lambda b, t: (0, 0)),
    ]

    out_shape = [jax.ShapeDtypeStruct((B, Sq, D), jnp.float32)]
    out_specs = [pl.BlockSpec((1, tq, D), lambda b, t: (b, t, 0))]
    if return_attn:
        out_shape.append(jax.ShapeDtypeStruct((B, n_heads, Sq, Sk), attn_dtype))
        out_specs.append(pl.BlockSpec((1, n_heads, tq, Sk), lambda b, t: (b, 0, t, 0)))

    kernel = functools.partial(mha_core_kernel, masked=masked,
                               return_attn=return_attn, ln_eps=ln_eps)

    results = pl.pallas_call(
        kernel,
        out_shape=tuple(out_shape),
        grid=(B, n_qt),
        in_specs=in_specs,
        out_specs=tuple(out_specs),
        compiler_params=pltpu.CompilerParams(
            dimension_semantics=("parallel", "parallel"),
            vmem_limit_bytes=vmem_limit,
        ),
    )(*args)

    if return_attn:
        out, attn = results
        return out, attn
    out = results[0] if isinstance(results, (tuple, list)) else results
    return out, None


# ---------------------------------------------------------------------------
# Parameter init + pure-JAX reference (for a sanity check)
# ---------------------------------------------------------------------------
def init_params(key, n_heads, d_model, d_k, d_v):
    k1, k2, k3, k4 = jax.random.split(key, 4)
    scale = 0.02
    return {
        "w_qs": scale * jax.random.normal(k1, (n_heads * d_k, d_model), jnp.float32),
        "w_ks": scale * jax.random.normal(k2, (n_heads * d_k, d_model), jnp.float32),
        "w_vs": scale * jax.random.normal(k3, (n_heads * d_v, d_model), jnp.float32),
        "fc":   scale * jax.random.normal(k4, (d_model, n_heads * d_v), jnp.float32),
        "ln_gamma": jnp.ones((d_model,), jnp.float32),
        "ln_beta":  jnp.zeros((d_model,), jnp.float32),
    }


def reference_mha(q, k, v, attn_mask, params, n_heads, d_k, d_v, ln_eps=1e-6):
    B, S, D = q.shape
    scale = 1.0 / (float(d_k) ** 0.5)
    Q = (q @ params["w_qs"].T).reshape(B, S, n_heads, d_k).transpose(0, 2, 1, 3)
    K = (k @ params["w_ks"].T).reshape(B, S, n_heads, d_k).transpose(0, 2, 1, 3)
    V = (v @ params["w_vs"].T).reshape(B, S, n_heads, d_v).transpose(0, 2, 1, 3)
    logits = jnp.einsum("bhqd,bhkd->bhqk", Q * scale, K)
    if attn_mask is not None:
        logits = jnp.where(attn_mask[:, None, :, :] == 0, -1e9, logits)
    attn = jax.nn.softmax(logits, axis=-1)
    ctx = jnp.einsum("bhqk,bhkd->bhqd", attn, V)
    ctx = ctx.transpose(0, 2, 1, 3).reshape(B, S, n_heads * d_v)
    y = ctx @ params["fc"].T + q
    mean = y.mean(-1, keepdims=True)
    var = ((y - mean) ** 2).mean(-1, keepdims=True)
    yn = (y - mean) / jnp.sqrt(var + ln_eps)
    return yn * params["ln_gamma"] + params["ln_beta"], attn


if __name__ == "__main__":
    B, S, d_model = 2, 8, 32
    n_heads, d_k, d_v = 4, 8, 8

    key = jax.random.PRNGKey(0)
    kq, kk, kv, kp = jax.random.split(key, 4)
    q = jax.random.normal(kq, (B, S, d_model), jnp.float32)
    k = jax.random.normal(kk, (B, S, d_model), jnp.float32)
    v = jax.random.normal(kv, (B, S, d_model), jnp.float32)
    # Lower-triangular (causal) mask; 0 => masked out.
    attn_mask = jnp.broadcast_to(jnp.tril(jnp.ones((S, S), jnp.int32)), (B, S, S))

    params = init_params(kp, n_heads, d_model, d_k, d_v)

    out, attn = multi_head_attention(
        q, k, v, attn_mask, params, n_heads=n_heads, d_k=d_k, d_v=d_v
    )
    jax.block_until_ready((out, attn))

    assert out.shape == (B, S, d_model)
    assert attn.shape == (B, n_heads, S, S)
    assert bool(jnp.all(jnp.isfinite(out))) and bool(jnp.all(jnp.isfinite(attn)))

    ref_out, ref_attn = reference_mha(q, k, v, attn_mask, params, n_heads, d_k, d_v)
    err_out = float(jnp.max(jnp.abs(out - ref_out)))
    err_attn = float(jnp.max(jnp.abs(attn.astype(jnp.float32) - ref_attn)))
    assert err_out < 5e-2 and err_attn < 5e-2, (err_out, err_attn)

    print("KERNEL_OK")
</pallas_src>

<mosaic_0001>
module attributes {stable_mosaic.version = 11 : i64} {
  func.func @qkv_proj_kernel(%arg0: i32, %arg1: memref<1x8x32xbf16, #tpu.memory_space<vmem>>, %arg2: memref<1x32x8xbf16, #tpu.memory_space<vmem>>, %arg3: memref<1x8x32xbf16, #tpu.memory_space<vmem>>, %arg4: memref<32x32xbf16, #tpu.memory_space<vmem>>, %arg5: memref<32x32xbf16, #tpu.memory_space<vmem>>, %arg6: memref<32x32xbf16, #tpu.memory_space<vmem>>, %arg7: memref<1x4x8x8xbf16, #tpu.memory_space<vmem>>, %arg8: memref<1x4x8x8xbf16, #tpu.memory_space<vmem>>, %arg9: memref<1x4x8x8xbf16, #tpu.memory_space<vmem>>) attributes {dimension_semantics = [#tpu.dimension_semantics<parallel>], iteration_bounds = array<i64: 2>, scalar_prefetch = 0 : i64, scratch_operands = 0 : i64, tpu.core_type = #tpu.core_type<tc>, window_params = [{transform_indices = @transform_0, window_bounds = array<i64: 1, 8, 32>}, {transform_indices = @transform_1, window_bounds = array<i64: 1, 32, 8>}, {transform_indices = @transform_2, window_bounds = array<i64: 1, 8, 32>}, {pipeline_mode = #tpu.pipeline_mode<synchronous>, transform_indices = @transform_3, window_bounds = array<i64: 32, 32>}, {pipeline_mode = #tpu.pipeline_mode<synchronous>, transform_indices = @transform_4, window_bounds = array<i64: 32, 32>}, {pipeline_mode = #tpu.pipeline_mode<synchronous>, transform_indices = @transform_5, window_bounds = array<i64: 32, 32>}, {transform_indices = @transform_6, window_bounds = array<i64: 1, 4, 8, 8>}, {transform_indices = @transform_7, window_bounds = array<i64: 1, 4, 8, 8>}, {transform_indices = @transform_8, window_bounds = array<i64: 1, 4, 8, 8>}]} {
    %c0 = arith.constant 0 : index
    %c0_0 = arith.constant 0 : index
    %c0_1 = arith.constant 0 : index
    %0 = vector.load %arg1[%c0, %c0_0, %c0_1] : memref<1x8x32xbf16, #tpu.memory_space<vmem>>, vector<1x8x32xbf16>
    %1 = vector.shape_cast %0 : vector<1x8x32xbf16> to vector<8x32xbf16>
    %c0_2 = arith.constant 0 : index
    %c0_3 = arith.constant 0 : index
    %2 = vector.load %arg4[%c0_2, %c0_3] : memref<32x32xbf16, #tpu.memory_space<vmem>>, vector<32x32xbf16>
    %cst = arith.constant dense<0.000000e+00> : vector<8x32xf32>
    %3 = tpu.matmul %1, %2, %cst {dimension_numbers = #tpu.dot_dimension_numbers<[1], [0], [0], [1], [0, 0, 1, 1], [], []>} : vector<8x32xbf16>, vector<32x32xbf16>, vector<8x32xf32> -> vector<8x32xf32>
    %c0_4 = arith.constant 0 : index
    %c0_5 = arith.constant 0 : index
    %4 = vector.load %arg5[%c0_4, %c0_5] : memref<32x32xbf16, #tpu.memory_space<vmem>>, vector<32x32xbf16>
    %c0_6 = arith.constant 0 : index
    %c0_7 = arith.constant 0 : index
    %c0_8 = arith.constant 0 : index
    %5 = vector.load %arg2[%c0_6, %c0_7, %c0_8] : memref<1x32x8xbf16, #tpu.memory_space<vmem>>, vector<1x32x8xbf16>
    %6 = vector.shape_cast %5 : vector<1x32x8xbf16> to vector<32x8xbf16>
    %cst_9 = arith.constant dense<0.000000e+00> : vector<32x8xf32>
    %7 = tpu.matmul %4, %6, %cst_9 {dimension_numbers = #tpu.dot_dimension_numbers<[1], [0], [0], [1], [0, 0, 1, 1], [], []>} : vector<32x32xbf16>, vector<32x8xbf16>, vector<32x8xf32> -> vector<32x8xf32>
    %c0_10 = arith.constant 0 : index
    %c0_11 = arith.constant 0 : index
    %c0_12 = arith.constant 0 : index
    %8 = vector.load %arg3[%c0_10, %c0_11, %c0_12] : memref<1x8x32xbf16, #tpu.memory_space<vmem>>, vector<1x8x32xbf16>
    %9 = vector.shape_cast %8 : vector<1x8x32xbf16> to vector<8x32xbf16>
    %c0_13 = arith.constant 0 : index
    %c0_14 = arith.constant 0 : index
    %10 = vector.load %arg6[%c0_13, %c0_14] : memref<32x32xbf16, #tpu.memory_space<vmem>>, vector<32x32xbf16>
    %cst_15 = arith.constant dense<0.000000e+00> : vector<8x32xf32>
    %11 = tpu.matmul %9, %10, %cst_15 {dimension_numbers = #tpu.dot_dimension_numbers<[1], [0], [0], [1], [0, 0, 1, 1], [], []>} : vector<8x32xbf16>, vector<32x32xbf16>, vector<8x32xf32> -> vector<8x32xf32>
    %12 = arith.truncf %3 : vector<8x32xf32> to vector<8x32xbf16>
    %13 = arith.truncf %7 : vector<32x8xf32> to vector<32x8xbf16>
    %14 = arith.truncf %11 : vector<8x32xf32> to vector<8x32xbf16>
    %15 = vector.extract_strided_slice %12 {offsets = [0, 0], sizes = [8, 8], strides = [1, 1]} : vector<8x32xbf16> to vector<8x8xbf16>
    %c0_16 = arith.constant 0 : index
    %c0_17 = arith.constant 0 : index
    %c0_18 = arith.constant 0 : index
    %c0_19 = arith.constant 0 : index
    %16 = vector.load %arg7[%c0_16, %c0_17, %c0_18, %c0_19] : memref<1x4x8x8xbf16, #tpu.memory_space<vmem>>, vector<1x1x8x8xbf16>
    %17 = vector.shape_cast %16 : vector<1x1x8x8xbf16> to vector<8x8xbf16>
    %18 = vector.shape_cast %15 : vector<8x8xbf16> to vector<1x1x8x8xbf16>
    tpu.vector_store %arg7[%c0_16, %c0_17, %c0_18, %c0_19], %18 {strides = array<i32>} : memref<1x4x8x8xbf16, #tpu.memory_space<vmem>>, vector<1x1x8x8xbf16>,
    %19 = vector.extract_strided_slice %13 {offsets = [0, 0], sizes = [8, 8], strides = [1, 1]} : vector<32x8xbf16> to vector<8x8xbf16>
    %c0_20 = arith.constant 0 : index
    %c0_21 = arith.constant 0 : index
    %c0_22 = arith.constant 0 : index
    %c0_23 = arith.constant 0 : index
    %20 = vector.load %arg8[%c0_20, %c0_21, %c0_22, %c0_23] : memref<1x4x8x8xbf16, #tpu.memory_space<vmem>>, vector<1x1x8x8xbf16>
    %21 = vector.shape_cast %20 : vector<1x1x8x8xbf16> to vector<8x8xbf16>
    %22 = vector.shape_cast %19 : vector<8x8xbf16> to vector<1x1x8x8xbf16>
    tpu.vector_store %arg8[%c0_20, %c0_21, %c0_22, %c0_23], %22 {strides = array<i32>} : memref<1x4x8x8xbf16, #tpu.memory_space<vmem>>, vector<1x1x8x8xbf16>,
    %23 = vector.extract_strided_slice %14 {offsets = [0, 0], sizes = [8, 8], strides = [1, 1]} : vector<8x32xbf16> to vector<8x8xbf16>
    %c0_24 = arith.constant 0 : index
    %c0_25 = arith.constant 0 : index
    %c0_26 = arith.constant 0 : index
    %c0_27 = arith.constant 0 : index
    %24 = vector.load %arg9[%c0_24, %c0_25, %c0_26, %c0_27] : memref<1x4x8x8xbf16, #tpu.memory_space<vmem>>, vector<1x1x8x8xbf16>
    %25 = vector.shape_cast %24 : vector<1x1x8x8xbf16> to vector<8x8xbf16>
    %26 = vector.shape_cast %23 : vector<8x8xbf16> to vector<1x1x8x8xbf16>
    tpu.vector_store %arg9[%c0_24, %c0_25, %c0_26, %c0_27], %26 {strides = array<i32>} : memref<1x4x8x8xbf16, #tpu.memory_space<vmem>>, vector<1x1x8x8xbf16>,
    %27 = vector.extract_strided_slice %12 {offsets = [0, 8], sizes = [8, 8], strides = [1, 1]} : vector<8x32xbf16> to vector<8x8xbf16>
    %c0_28 = arith.constant 0 : index
    %c1 = arith.constant 1 : index
    %c0_29 = arith.constant 0 : index
    %c0_30 = arith.constant 0 : index
    %28 = vector.load %arg7[%c0_28, %c1, %c0_29, %c0_30] : memref<1x4x8x8xbf16, #tpu.memory_space<vmem>>, vector<1x1x8x8xbf16>
    %29 = vector.shape_cast %28 : vector<1x1x8x8xbf16> to vector<8x8xbf16>
    %30 = vector.shape_cast %27 : vector<8x8xbf16> to vector<1x1x8x8xbf16>
    tpu.vector_store %arg7[%c0_28, %c1, %c0_29, %c0_30], %30 {strides = array<i32>} : memref<1x4x8x8xbf16, #tpu.memory_space<vmem>>, vector<1x1x8x8xbf16>,
    %31 = vector.extract_strided_slice %13 {offsets = [8, 0], sizes = [8, 8], strides = [1, 1]} : vector<32x8xbf16> to vector<8x8xbf16>
    %c0_31 = arith.constant 0 : index
    %c1_32 = arith.constant 1 : index
    %c0_33 = arith.constant 0 : index
    %c0_34 = arith.constant 0 : index
    %32 = vector.load %arg8[%c0_31, %c1_32, %c0_33, %c0_34] : memref<1x4x8x8xbf16, #tpu.memory_space<vmem>>, vector<1x1x8x8xbf16>
    %33 = vector.shape_cast %32 : vector<1x1x8x8xbf16> to vector<8x8xbf16>
    %34 = vector.shape_cast %31 : vector<8x8xbf16> to vector<1x1x8x8xbf16>
    tpu.vector_store %arg8[%c0_31, %c1_32, %c0_33, %c0_34], %34 {strides = array<i32>} : memref<1x4x8x8xbf16, #tpu.memory_space<vmem>>, vector<1x1x8x8xbf16>,
    %35 = vector.extract_strided_slice %14 {offsets = [0, 8], sizes = [8, 8], strides = [1, 1]} : vector<8x32xbf16> to vector<8x8xbf16>
    %c0_35 = arith.constant 0 : index
    %c1_36 = arith.constant 1 : index
    %c0_37 = arith.constant 0 : index
    %c0_38 = arith.constant 0 : index
    %36 = vector.load %arg9[%c0_35, %c1_36, %c0_37, %c0_38] : memref<1x4x8x8xbf16, #tpu.memory_space<vmem>>, vector<1x1x8x8xbf16>
    %37 = vector.shape_cast %36 : vector<1x1x8x8xbf16> to vector<8x8xbf16>
    %38 = vector.shape_cast %35 : vector<8x8xbf16> to vector<1x1x8x8xbf16>
    tpu.vector_store %arg9[%c0_35, %c1_36, %c0_37, %c0_38], %38 {strides = array<i32>} : memref<1x4x8x8xbf16, #tpu.memory_space<vmem>>, vector<1x1x8x8xbf16>,
    %39 = vector.extract_strided_slice %12 {offsets = [0, 16], sizes = [8, 8], strides = [1, 1]} : vector<8x32xbf16> to vector<8x8xbf16>
    %c0_39 = arith.constant 0 : index
    %c2 = arith.constant 2 : index
    %c0_40 = arith.constant 0 : index
    %c0_41 = arith.constant 0 : index
    %40 = vector.load %arg7[%c0_39, %c2, %c0_40, %c0_41] : memref<1x4x8x8xbf16, #tpu.memory_space<vmem>>, vector<1x1x8x8xbf16>
    %41 = vector.shape_cast %40 : vector<1x1x8x8xbf16> to vector<8x8xbf16>
    %42 = vector.shape_cast %39 : vector<8x8xbf16> to vector<1x1x8x8xbf16>
    tpu.vector_store %arg7[%c0_39, %c2, %c0_40, %c0_41], %42 {strides = array<i32>} : memref<1x4x8x8xbf16, #tpu.memory_space<vmem>>, vector<1x1x8x8xbf16>,
    %43 = vector.extract_strided_slice %13 {offsets = [16, 0], sizes = [8, 8], strides = [1, 1]} : vector<32x8xbf16> to vector<8x8xbf16>
    %c0_42 = arith.constant 0 : index
    %c2_43 = arith.constant 2 : index
    %c0_44 = arith.constant 0 : index
    %c0_45 = arith.constant 0 : index
    %44 = vector.load %arg8[%c0_42, %c2_43, %c0_44, %c0_45] : memref<1x4x8x8xbf16, #tpu.memory_space<vmem>>, vector<1x1x8x8xbf16>
    %45 = vector.shape_cast %44 : vector<1x1x8x8xbf16> to vector<8x8xbf16>
    %46 = vector.shape_cast %43 : vector<8x8xbf16> to vector<1x1x8x8xbf16>
    tpu.vector_store %arg8[%c0_42, %c2_43, %c0_44, %c0_45], %46 {strides = array<i32>} : memref<1x4x8x8xbf16, #tpu.memory_space<vmem>>, vector<1x1x8x8xbf16>,
    %47 = vector.extract_strided_slice %14 {offsets = [0, 16], sizes = [8, 8], strides = [1, 1]} : vector<8x32xbf16> to vector<8x8xbf16>
    %c0_46 = arith.constant 0 : index
    %c2_47 = arith.constant 2 : index
    %c0_48 = arith.constant 0 : index
    %c0_49 = arith.constant 0 : index
    %48 = vector.load %arg9[%c0_46, %c2_47, %c0_48, %c0_49] : memref<1x4x8x8xbf16, #tpu.memory_space<vmem>>, vector<1x1x8x8xbf16>
    %49 = vector.shape_cast %48 : vector<1x1x8x8xbf16> to vector<8x8xbf16>
    %50 = vector.shape_cast %47 : vector<8x8xbf16> to vector<1x1x8x8xbf16>
    tpu.vector_store %arg9[%c0_46, %c2_47, %c0_48, %c0_49], %50 {strides = array<i32>} : memref<1x4x8x8xbf16, #tpu.memory_space<vmem>>, vector<1x1x8x8xbf16>,
    %51 = vector.extract_strided_slice %12 {offsets = [0, 24], sizes = [8, 8], strides = [1, 1]} : vector<8x32xbf16> to vector<8x8xbf16>
    %c0_50 = arith.constant 0 : index
    %c3 = arith.constant 3 : index
    %c0_51 = arith.constant 0 : index
    %c0_52 = arith.constant 0 : index
    %52 = vector.load %arg7[%c0_50, %c3, %c0_51, %c0_52] : memref<1x4x8x8xbf16, #tpu.memory_space<vmem>>, vector<1x1x8x8xbf16>
    %53 = vector.shape_cast %52 : vector<1x1x8x8xbf16> to vector<8x8xbf16>
    %54 = vector.shape_cast %51 : vector<8x8xbf16> to vector<1x1x8x8xbf16>
    tpu.vector_store %arg7[%c0_50, %c3, %c0_51, %c0_52], %54 {strides = array<i32>} : memref<1x4x8x8xbf16, #tpu.memory_space<vmem>>, vector<1x1x8x8xbf16>,
    %55 = vector.extract_strided_slice %13 {offsets = [24, 0], sizes = [8, 8], strides = [1, 1]} : vector<32x8xbf16> to vector<8x8xbf16>
    %c0_53 = arith.constant 0 : index
    %c3_54 = arith.constant 3 : index
    %c0_55 = arith.constant 0 : index
    %c0_56 = arith.constant 0 : index
    %56 = vector.load %arg8[%c0_53, %c3_54, %c0_55, %c0_56] : memref<1x4x8x8xbf16, #tpu.memory_space<vmem>>, vector<1x1x8x8xbf16>
    %57 = vector.shape_cast %56 : vector<1x1x8x8xbf16> to vector<8x8xbf16>
    %58 = vector.shape_cast %55 : vector<8x8xbf16> to vector<1x1x8x8xbf16>
    tpu.vector_store %arg8[%c0_53, %c3_54, %c0_55, %c0_56], %58 {strides = array<i32>} : memref<1x4x8x8xbf16, #tpu.memory_space<vmem>>, vector<1x1x8x8xbf16>,
    %59 = vector.extract_strided_slice %14 {offsets = [0, 24], sizes = [8, 8], strides = [1, 1]} : vector<8x32xbf16> to vector<8x8xbf16>
    %c0_57 = arith.constant 0 : index
    %c3_58 = arith.constant 3 : index
    %c0_59 = arith.constant 0 : index
    %c0_60 = arith.constant 0 : index
    %60 = vector.load %arg9[%c0_57, %c3_58, %c0_59, %c0_60] : memref<1x4x8x8xbf16, #tpu.memory_space<vmem>>, vector<1x1x8x8xbf16>
    %61 = vector.shape_cast %60 : vector<1x1x8x8xbf16> to vector<8x8xbf16>
    %62 = vector.shape_cast %59 : vector<8x8xbf16> to vector<1x1x8x8xbf16>
    tpu.vector_store %arg9[%c0_57, %c3_58, %c0_59, %c0_60], %62 {strides = array<i32>} : memref<1x4x8x8xbf16, #tpu.memory_space<vmem>>, vector<1x1x8x8xbf16>,
    return
  }
  func.func @transform_0(%arg0: i32) -> (i32, i32, i32) {
    %c0_i32 = arith.constant 0 : i32
    %c0_i32_0 = arith.constant 0 : i32
    %c0_i32_1 = arith.constant 0 : i32
    return %arg0, %c0_i32, %c0_i32_0 : i32, i32, i32
  }
  func.func @transform_1(%arg0: i32) -> (i32, i32, i32) {
    %c0_i32 = arith.constant 0 : i32
    %c0_i32_0 = arith.constant 0 : i32
    %c0_i32_1 = arith.constant 0 : i32
    return %arg0, %c0_i32, %c0_i32_0 : i32, i32, i32
  }
  func.func @transform_2(%arg0: i32) -> (i32, i32, i32) {
    %c0_i32 = arith.constant 0 : i32
    %c0_i32_0 = arith.constant 0 : i32
    %c0_i32_1 = arith.constant 0 : i32
    return %arg0, %c0_i32, %c0_i32_0 : i32, i32, i32
  }
  func.func @transform_3(%arg0: i32) -> (i32, i32) {
    %c0_i32 = arith.constant 0 : i32
    %c0_i32_0 = arith.constant 0 : i32
    %c0_i32_1 = arith.constant 0 : i32
    return %c0_i32, %c0_i32_0 : i32, i32
  }
  func.func @transform_4(%arg0: i32) -> (i32, i32) {
    %c0_i32 = arith.constant 0 : i32
    %c0_i32_0 = arith.constant 0 : i32
    %c0_i32_1 = arith.constant 0 : i32
    return %c0_i32, %c0_i32_0 : i32, i32
  }
  func.func @transform_5(%arg0: i32) -> (i32, i32) {
    %c0_i32 = arith.constant 0 : i32
    %c0_i32_0 = arith.constant 0 : i32
    %c0_i32_1 = arith.constant 0 : i32
    return %c0_i32, %c0_i32_0 : i32, i32
  }
  func.func @transform_6(%arg0: i32) -> (i32, i32, i32, i32) {
    %c0_i32 = arith.constant 0 : i32
    %c0_i32_0 = arith.constant 0 : i32
    %c0_i32_1 = arith.constant 0 : i32
    %c0_i32_2 = arith.constant 0 : i32
    return %arg0, %c0_i32, %c0_i32_0, %c0_i32_1 : i32, i32, i32, i32
  }
  func.func @transform_7(%arg0: i32) -> (i32, i32, i32, i32) {
    %c0_i32 = arith.constant 0 : i32
    %c0_i32_0 = arith.constant 0 : i32
    %c0_i32_1 = arith.constant 0 : i32
    %c0_i32_2 = arith.constant 0 : i32
    return %arg0, %c0_i32, %c0_i32_0, %c0_i32_1 : i32, i32, i32, i32
  }
  func.func @transform_8(%arg0: i32) -> (i32, i32, i32, i32) {
    %c0_i32 = arith.constant 0 : i32
    %c0_i32_0 = arith.constant 0 : i32
    %c0_i32_1 = arith.constant 0 : i32
    %c0_i32_2 = arith.constant 0 : i32
    return %arg0, %c0_i32, %c0_i32_0, %c0_i32_1 : i32, i32, i32, i32
  }
}

</mosaic_0001>

<bundles_post_ra>
// kernel: tpu_custom_call.1
= control target key start
LH: loop header
LB: loop body
LE: loop exit
PB: predicated region body
PF: predicated region fallthrough
CT: control target
= control target key end

     0   :  { %s1435_s0 = inlined_call_operand.vmem [shape: bf16[2,8,32], index: 0, kind: input, shape index: {}]   ;;  %s1436_s1 = inlined_call_operand.vmem [shape: bf16[2,32,8], index: 1, kind: input, shape index: {}]   ;;  %s1437_s2 = inlined_call_operand.hbm [shape: bf16[2,8,32], index: 2, kind: input, shape index: {}]   ;;  %s1438_s3 = inlined_call_operand.vmem [shape: bf16[32,32], index: 3, kind: input, shape index: {}]   ;;  %s1439_s4 = inlined_call_operand.vmem [shape: bf16[32,32], index: 4, kind: input, shape index: {}]   ;;  %s1440_s5 = inlined_call_operand.hbm [shape: bf16[32,32], index: 5, kind: input, shape index: {}]   ;;  %s1441_s6 = inlined_call_operand.hbm [shape: bf16[2,4,8,8], index: 6, kind: output, shape index: {0}]   ;;  %s1442_s7 = inlined_call_operand.hbm [shape: bf16[2,4,8,8], index: 7, kind: output, shape index: {1}]   ;;  %s1443_s8 = inlined_call_operand.hbm [shape: bf16[2,4,8,8], index: 8, kind: output, shape index: {2}]  }
   0x1   :  { %1449 = sst [smem:[#allocation16_spill]] %s1435_s0 }
   0x2   :  { %1450 = sst [smem:[#allocation17_spill]] %s1436_s1 }
   0x3   :  { %1451 = sst [smem:[#allocation18_spill]] %s1440_s5 }
   0x4   :  { %14 = vsyncpa [#allocation3], 0 }
   0x5   :  { %16 = vsyncpa [#allocation3 + $0x1], 0 }
   0x6   :  { %17 = vsyncpa [#allocation6], 0 }
   0x7   :  { %18 = vsyncpa [#allocation4], 0 }
   0x8   :  { %20 = vsyncpa [#allocation4 + $0x1], 0 }
   0x9   :  { %21 = vsyncpa [#allocation9], 0 }
   0xa   :  { %23 = vsyncpa [#allocation9 + $0x1], 0  ;;  %s1200_s27 = smov 0   ;;  %s1202_s28 = smov 0  }
   0xb   :  { %s1204_s29 = smov 0   ;;  %s1206_s30 = smov 0  }
   0xc LB: > { %s1452_s5 = sld [smem:[#allocation18_spill]]  ;;  %s1224_s12 = sadd.s32 4294967295, %s1145_s30   ;;  %s1145_s30 = sphi %s1206_s30, %s1469_s30   ;;  %s1141_s29 = sphi %s1204_s29, %s1468_s29   ;;  %s1137_s28 = sphi %s1202_s28, %s1467_s28   ;;  %s1133_s27 = sphi %s1200_s27, %s1466_s27  }
   0xd   : > { %p797_p0 = scmp.ge.s32.totalorder %s1145_s30, 1  ;;  %p102_p1 = scmp.eq.s32.totalorder %s1224_s12, 0 }
   0xe   : > { %p253_p2 = scmp.lt.s32.totalorder %s1145_s30, 3  ;;  %s1147_s14 = smov [#allocation5]  }
   0xf   : > { %s272_s15 = sshll.u32 %s1147_s14, 4  ;;  %s1148_s16 = smov 64   ;;  %s273_s15 = int_to_ptr.vmem [resolvable:$true] %s272_s15 }
  0x10   : > { %p1229_p3 = pnand %p797_p0, %p253_p2  ;;  %s1149_s17 = smov 4  }
  0x11   : > { %s1444_s18 = sadd.s32 4294967294, %s1145_s30   ;;  %s1240_s19 = sadd.s32 1, %s1145_s30  }
  0x12   : > { %s270_s11 = sshll.u32 %s1452_s5, 4  ;;  %p893_p4 = pneg %p1229_p3  ;;  %s271_s11 = int_to_ptr.hbm [resolvable:$true] %s270_s11 }
  0x13   : > { %s88_s20 = sadd.s32 1, %s1141_s29  ;;  %s85_s21 = ssub.s32 %s1145_s30, %s1240_s19 }
  0x14   : > { %p894_p6 = pnand %p893_p4, %p102_p1  ;;  %p95_p7 = scmp.ne.s32.totalorder %s1141_s29, %s1137_s28 }
  0x15   : > { %p86_p8 = scmp.eq.s32.totalorder %s85_s21, 0  ;;  %p96_p9 = scmp.eq.s32.totalorder %s1145_s30, 0 }
  0x16   : > { %896 = dma.hbm_to_vmem [thread:$0]  (!%p894_p6), %s271_s11, 256, %s273_s15, [#allocation6], %s1148_s16, %s1148_s16, %s1149_s17  }
  0x17   : > { %p101_p10 = scmp.ne.s32.totalorder %s1137_s28, %s1133_s27  ;;  %p188_p11 = scmp.eq.s32.totalorder %s1224_s12, 1 }
  0x18   : > { %s1252_s22 = scalar_select %p86_p8, %s1141_s29, %s88_s20  }
  0x19   : > { %p1256_p12 = por %p102_p1, %p101_p10  ;;  %p1260_p13 = por %p188_p11, %p95_p7 }
  0x1a   : > { %1454 = sst [smem:[#allocation15_spill]] %s1252_s22  ;;  %p194_p0 = scmp.eq.s32.totalorder %s1444_s18, 1 }
  0x1b   : > { %p97_p2 = por %p96_p9, %p95_p7  ;;  %s301_s25 = sand.u32 1, %s1141_s29  }
  0x1c   : > { %p1267_p4 = por %p194_p0, %p101_p10  ;;  %p912_p6 = scmp.lt.s32.totalorder %s1145_s30, 2 }
  0x1d   : > { %s800_s9 = sshll.u32 %s301_s25, 2  ;;  %s801_s10 = sshll.u32 %s1145_s30, 2 }
  0x1e   : > { %s309_s15 = scalar_lea.hbm %s1437_s2, %s801_s10  ;;  %s305_s17 = scalar_lea.vmem [#allocation2], %s800_s9 }
  0x1f   : > { %s311_s16 = sshll.u32 %s309_s15, 4  ;;  %s313_s20 = sshll.u32 %s305_s17, 4  ;;  %s312_s16 = int_to_ptr.hbm [resolvable:$true] %s311_s16  ;;  %s314_s20 = int_to_ptr.vmem [resolvable:$true] %s313_s20 }
  0x20   : > { %p1276_p8 = pnand %p912_p6, %p97_p2  ;;  %s302_s18 = scalar_lea.sflag [#allocation3], %s301_s25 }
  0x21   : > { %s985_s5 = sshra.s32 %s312_s16, 4  ;;  %s992_s9 = scalar_lea.hbm %s1437_s2, 8  ;;  %s986_s5 = int_to_ptr.hbm [resolvable:$true] %s985_s5 }
  0x22   : > { %s987_s22 = scalar_lea.hbm %s986_s5, 4  ;;  %p989_p9 = pneg %p1276_p8 }
  0x23   : > { %p988_p7 = scmp.ne.s32.totalorder %s986_s5, %s987_s22  ;;  %p993_p0 = scmp.lt.s32.totalorder %s986_s5, %s1437_s2 }
  0x24   : > { %p994_p2 = scmp.lt.s32.totalorder %s992_s9, %s987_s22 }
  0x25   : > { %p990_p10 = pnand %p989_p9, %p988_p7 }
  0x26   : > { %p995_p6 = por %p994_p2, %p993_p0 }
  0x27   : > { %p991_p11 = pneg %p990_p10 }
  0x29   : > { %p996_p5 = pnand %p995_p6, %p991_p11 }
  0x2b   : > { %999 = shalt.err (!%p996_p5)
}
  0x2c   : > { %900 = dma.hbm_to_vmem [thread:$0]  (!%p1276_p8), %s312_s16, 64, %s314_s20, %s302_s18  }
  0x2d   : > { %322 = sbr.rel (%p1229_p3) target bundleno = 323 (0x143), region = 44  ;;  %s1293_s25 = sand.u32 (!%p1229_p3), 1, %s1137_s28  }
  0x2e   : > { %s803_s17 = sshll.u32 (!%p1229_p3), %s1293_s25, 2  ;;  %s325_s10 = scalar_lea.sflag (!%p1229_p3), [#allocation3], %s1293_s25 }
  0x2f   : > { %s328_s11 = scalar_lea.vmem (!%p1229_p3), [#allocation2], %s803_s17 }
  0x32   : > { %1116 = dma.done.wait (%p1256_p12), %s325_s10, 64  }
  0x33   : > { %1118 = vsyncadd (%p1256_p12), %s325_s10, 4294967232 }
  0x34   : > { %1120 = dma.done.wait (%p102_p1), [#allocation6], 256  }
  0x35   : > { %1122 = vsyncadd (%p102_p1), [#allocation6], 4294967040  ;;  %p386_p3 = scmp.lt.s32.totalorder %s1224_s12, 1  ;;  %s1459_s1 = sld [smem:[#allocation17_spill]]  ;;  %v869_v0 = vld [vmem:[%s1438_s3 + $0x8] sm:$0xff]  ;;  %v875_v1 = vld [vmem:[#allocation5 + $0x8] sm:$0xff] }
  0x36   : > { %423 = vmatpush.bf16.msra.mxu0 %v869_v0  ;;  %511 = vmatpush.bf16.msra.mxu2 %v875_v1  ;;  %v868_v2 = vld [vmem:[%s1438_s3] sm:$0xff]  ;;  %v874_v3 = vld [vmem:[#allocation5] sm:$0xff]  ;;  %s1460_s0 = sld [smem:[#allocation16_spill]]  ;;  %vm413_vm0 = vcmask 261120   ;;  %vm524_vm1 = vcmask 60416   ;;  %s1151_s21 = smov 112  }
  0x37   : > { %s387_s5 = scalar_select %p386_p3, %s1224_s12, 1  ;;  %v485_v7 = vld [vmem:[%s328_s11] sm:$0xf]  ;;  %v871_v8 = vld [vmem:[%s1439_s4 + $0x8] sm:$0xff] }
  0x38   : > { %v870_v9 = vld [vmem:[%s1439_s4] sm:$0xff]  ;;  %s1150_s11 = smov 104   ;;  %s1335_s14 = sshll.u32 %s1224_s12, 4 }
  0x39   : > { %s867_s13 = sshll.u32 %s387_s5, 4  ;;  %s808_s23 = sshll.u32 %s387_s5, 2 }
  0x3a   : > { %424 = vmatpush.bf16.msra.mxu0 %v868_v2  ;;  %512 = vmatpush.bf16.msra.mxu2 %v874_v3  ;;  %s605_s5 = scalar_lea.hbm %s1442_s7, %s1335_s14  ;;  %s571_s18 = sand.u32 1, %s1224_s12  }
  0x3b   : > { %s394_s16 = scalar_lea.vmem %s1459_s1, %s867_s13  ;;  %s1344_s22 = sshll.u32 %s605_s5, 4  ;;  %s609_s22 = int_to_ptr.hbm [resolvable:$true] %s1344_s22 }
  0x3c   : > { %v873_v4 = vld [vmem:[%s394_s16 + $0x8] sm:$0xff]  ;;  %s389_s10 = scalar_lea.vmem %s1460_s0, %s808_s23  ;;  %v872_v5 = vld [vmem:[%s394_s16] sm:$0xff]  ;;  %s805_s16 = sshll.u32 %s1293_s25, 4 }
  0x3d   : > { %879 = vmatpush.bf16.msra.mxu3 %v873_v4  ;;  %472 = vmatpush.bf16.msra.mxu1 %v873_v4  ;;  %v396_v6 = vld [vmem:[%s389_s10] sm:$0xf]  ;;  %s1326_s20 = scalar_lea.vmem [#allocation7], %s805_s16  ;;  %s1152_s23 = smov 120  }
  0x3e   : > { %819 = vmatmul.msk.bf16.vlgmr.msra.gmra.mxu0 %vm413_vm0, %v396_v6  ;;  %846 = vmatmul.msk.bf16.vlgmr.msra.gmra.mxu2 %vm413_vm0, %v485_v7  ;;  %s1330_s9 = scalar_lea.vmem [#allocation10], %s805_s16  ;;  %s378_s15 = scalar_lea.vmem [#allocation8], %s805_s16 }
  0x3f   : > { %s606_s13 = sshll.u32 %s378_s15, 4  ;;  %s1349_s16 = scalar_lea.sflag [#allocation9], %s571_s18  ;;  %s607_s13 = int_to_ptr.vmem [resolvable:$true] %s606_s13 }
  0x40   : > { %s1035_s17 = scalar_lea.hbm %s1442_s7, 32 }
  0x41   : > { %880 = vmatpush.bf16.msra.mxu3 %v872_v5  ;;  %473 = vmatpush.bf16.msra.mxu1 %v872_v5 }
  0x44   : > { %837 = vmatmul.msk.bf16.vlgmr.msra.gmra.mxu3 %vm413_vm0, %v871_v8  ;;  %836 = vmatmul.msk.bf16.vlgmr.msra.gmra.mxu1 %vm413_vm0, %v870_v9 }
  0xbb   : > { %v426_v10 = vpop.f32.mrf.mxu0 }
  0xbc   : > { %v518_v11 = vpack.c.bf16 %v426_v10, %v426_v10 }
  0xbe   : > { %525 = vst.msk [vmem:[%s1326_s20] sm:$0xf] %vm524_vm1, %v518_v11  ;;  %554 = vrot.lane.b32.xlu2 %v518_v11, %s1150_s11  ;;  %542 = vrot.lane.b32.xlu1 %v518_v11, %s1151_s21 }
  0xbf   : > { %529 = vrot.lane.b32.xlu0 %v518_v11, %s1152_s23 }
  0xc1   : > { %v514_v12 = vpop.f32.mrf.mxu2  ;;  %v475_v16 = vpop.f32.mrf.mxu1 }
  0xc2   : > { %v523_v13 = vpack.c.bf16 %v514_v12, %v514_v12  ;;  %v519_v18 = vpack.c.bf16 %v475_v16, %v475_v16 }
  0xc3   : > { %v428_v14 = vpop.f32.mrf.mxu0 }
  0xc4   : > { %527 = vst.msk [vmem:[%s1330_s9] sm:$0xf] %vm524_vm1, %v523_v13 }
  0xc5   : > { %526 = vst.msk [vmem:[%s378_s15] sm:$0xf] %vm524_vm1, %v519_v18 }
  0xc6   : > { %561 = vrot.lane.b32.xlu2 %v523_v13, %s1150_s11  ;;  %549 = vrot.lane.b32.xlu1 %v523_v13, %s1151_s21  ;;  %s1029_s11 = sshra.s32 %s609_s22, 4  ;;  %s1030_s11 = int_to_ptr.hbm [resolvable:$true] %s1029_s11 }
  0xc7   : > { %537 = vrot.lane.b32.xlu0 %v523_v13, %s1152_s23  ;;  %v480_v17 = vpop.f32.mrf.mxu3  ;;  %s1031_s21 = scalar_lea.hbm %s1030_s11, 16  ;;  %p1036_p8 = scmp.lt.s32.totalorder %s1030_s11, %s1442_s7 }
  0xc8   : > { %v521_v19 = vpack.c.bf16 %v480_v17, %v480_v17  ;;  %p1032_p1 = scmp.ne.s32.totalorder %s1030_s11, %s1031_s21  ;;  %p1037_p7 = scmp.lt.s32.totalorder %s1035_s17, %s1031_s21 }
  0xc9   : > { %v516_v15 = vpop.f32.mrf.mxu2  ;;  %v477_v20 = vpop.f32.mrf.mxu1 }
  0xca   : > { %851 = vst.msk [vmem:[%s378_s15 + $0x8] sm:$0xf] %vm524_vm1, %v521_v19  ;;  %v520_v22 = vpack.c.bf16 %v477_v20, %v477_v20  ;;  %p1033_p5 = pnand %p1032_p1, %p1260_p13  ;;  %p1038_p9 = por %p1037_p7, %p1036_p8 }
  0xcc   : > { %848 = vst.msk [vmem:[%s378_s15 + $0x4] sm:$0xf] %vm524_vm1, %v520_v22  ;;  %p1034_p12 = pneg %p1033_p5 }
  0xce   : > { %p1039_p10 = pnand %p1038_p9, %p1034_p12 }
  0xcf   : > { %v482_v21 = vpop.f32.mrf.mxu3 }
  0xd0   : > { %v522_v23 = vpack.c.bf16 %v482_v21, %v482_v21 }
  0xd2   : > { %854 = vst.msk [vmem:[%s378_s15 + $0xc] sm:$0xf] %vm524_vm1, %v522_v23 }
  0xd3   : > { %1042 = shalt.err (!%p1039_p10)
}
  0xd4   : > { %s1445_s15 = smov 64   ;;  %s1447_s18 = smov 4  }
  0xd5   : > { %888 = dma.vmem_to_hbm [thread:$0]  (%p1260_p13), %s607_s13, 256, %s609_s22, %s1349_s16, %s1445_s15, %s1445_s15, %s1447_s18  }
  0xd6   : > { %s588_s12 = scalar_lea.hbm %s1441_s6, %s1335_s14  ;;  %s589_s23 = sshll.u32 %s1326_s20, 4  ;;  %s590_s23 = int_to_ptr.vmem [resolvable:$true] %s589_s23 }
  0xd7   : > { %s591_s17 = sshll.u32 %s588_s12, 4  ;;  %s622_s10 = scalar_lea.hbm %s1443_s8, %s1335_s14  ;;  %s592_s17 = int_to_ptr.hbm [resolvable:$true] %s591_s17 }
  0xd8   : > { %s567_s5 = scalar_lea.sflag [#allocation4], %s1293_s25  ;;  %s1057_s15 = sshra.s32 %s592_s17, 4  ;;  %s1058_s15 = int_to_ptr.hbm [resolvable:$true] %s1057_s15 }
  0xd9   : > { %s1059_s11 = scalar_lea.hbm %s1058_s15, 16  ;;  %s1063_s18 = scalar_lea.hbm %s1441_s6, 32 }
  0xda   : > { %p1060_p11 = scmp.ne.s32.totalorder %s1058_s15, %s1059_s11  ;;  %p1064_p6 = scmp.lt.s32.totalorder %s1058_s15, %s1441_s6 }
  0xdb   : > { %p1065_p3 = scmp.lt.s32.totalorder %s1063_s18, %s1059_s11 }
  0xdc   : > { %p1061_p0 = pnand %p1060_p11, %p1260_p13 }
  0xdd   : > { %p1066_p1 = por %p1065_p3, %p1064_p6 }
  0xde   : > { %p1062_p2 = pneg %p1061_p0 }
  0xe0   : > { %p1067_p5 = pnand %p1066_p1, %p1062_p2 }
 0x118   : > { %v555_v24 = vpop.permute.xlu2 %554 }
 0x119   : > { %853 = vst.msk [vmem:[%s1326_s20 + $0xc] sm:$0xf] %vm524_vm1, %v555_v24 }
 0x120   : > { %v562_v25 = vpop.permute.xlu2 %561 }
 0x121   : > { %855 = vst.msk [vmem:[%s1330_s9 + $0xc] sm:$0xf] %vm524_vm1, %v562_v25 }
 0x130   : > { %v543_v26 = vpop.permute.xlu1 %542 }
 0x131   : > { %850 = vst.msk [vmem:[%s1326_s20 + $0x8] sm:$0xf] %vm524_vm1, %v543_v26  ;;  %v530_v27 = vpop.permute.xlu0 %529 }
 0x132   : > { %847 = vst.msk [vmem:[%s1326_s20 + $0x4] sm:$0xf] %vm524_vm1, %v530_v27 }
 0x133   : > { %1070 = shalt.err (!%p1067_p5)
}
 0x134   : > { %s1461_s25 = smov 4   ;;  %s1462_s20 = smov 64  }
 0x135   : > { %887 = dma.vmem_to_hbm [thread:$0]  (%p1260_p13), %s590_s23, 256, %s592_s17, %s567_s5, %s1462_s20, %s1462_s20, %s1461_s25  }
 0x136   : > { %s623_s14 = sshll.u32 %s1330_s9, 4  ;;  %s625_s13 = sshll.u32 %s622_s10, 4  ;;  %s624_s14 = int_to_ptr.vmem [resolvable:$true] %s623_s14  ;;  %s626_s13 = int_to_ptr.hbm [resolvable:$true] %s625_s13 }
 0x137   : > { %s1085_s0 = sshra.s32 %s626_s13, 4  ;;  %s1091_s23 = scalar_lea.hbm %s1443_s8, 32  ;;  %s1086_s0 = int_to_ptr.hbm [resolvable:$true] %s1085_s0 }
 0x138   : > { %v550_v28 = vpop.permute.xlu1 %549  ;;  %s1087_s1 = scalar_lea.hbm %s1086_s0, 16  ;;  %p1092_p9 = scmp.lt.s32.totalorder %s1086_s0, %s1443_s8 }
 0x139   : > { %852 = vst.msk [vmem:[%s1330_s9 + $0x8] sm:$0xf] %vm524_vm1, %v550_v28  ;;  %v538_v29 = vpop.permute.xlu0 %537  ;;  %p1088_p12 = scmp.ne.s32.totalorder %s1086_s0, %s1087_s1  ;;  %p1093_p10 = scmp.lt.s32.totalorder %s1091_s23, %s1087_s1 }
 0x13a   : > { %849 = vst.msk [vmem:[%s1330_s9 + $0x4] sm:$0xf] %vm524_vm1, %v538_v29 }
 0x13b   : > { %p1089_p8 = pnand %p1088_p12, %p1260_p13  ;;  %p1094_p11 = por %p1093_p10, %p1092_p9 }
 0x13d   : > { %p1090_p7 = pneg %p1089_p8 }
 0x13f   : > { %p1095_p0 = pnand %p1094_p11, %p1090_p7 }
 0x141   : > { %1098 = shalt.err (!%p1095_p0)
}
 0x142   : > { %889 = dma.vmem_to_hbm [thread:$0]  (%p1260_p13), %s624_s14, 256, %s626_s13, %s1349_s16, %s1462_s20, %s1462_s20, %s1461_s25  }
 0x143 PF: > { %s640_s9 = sand.u32 1, %s1133_s27   ;;  %p1463_p2 = scmp.ge.s32.totalorder %s1145_s30, 2 }
 0x144   : > { %s641_s10 = scalar_lea.sflag [#allocation4], %s640_s9 }
 0x145   : > { %p902_p6 = pnand %p1463_p2, %p1267_p4 }
 0x147   : > { %p903_p3 = pneg %p902_p6 }
 0x149   : > { %1124 = dma.done.wait (%p903_p3), %s641_s10, 256  }
 0x14a   : > { %1126 = vsyncadd (%p903_p3), %s641_s10, 4294967040  ;;  %s1464_s5 = sadd.s32 4294967294, %s1145_s30  }
 0x14b   : > { %s650_s24 = sand.u32 1, %s1464_s5  }
 0x14c   : > { %s651_s11 = scalar_lea.sflag [#allocation9], %s650_s24 }
 0x14d   : > { %1128 = dma.done.wait (%p903_p3), %s651_s11, 512  }
 0x14e   : > { %1130 = vsyncadd (%p903_p3), %s651_s11, 4294966784  ;;  %s1465_s16 = sld [smem:[#allocation15_spill]]  ;;  %p26_p13 = scmp.ge.s32.totalorder %s1240_s19, 4  }
 0x14f   : > { %s1466_s27 = smov %s1137_s28  ;;  %s1467_s28 = smov %s1141_s29 }
 0x150   : > { %s1469_s30 = smov %s1240_s19  ;;  %28 = sbr.rel (!%p26_p13) target bundleno = 12 (0xc), region = 140 }
 0x154   : > { %s1468_s29 = smov %s1465_s16 }
 0x155   :  { %667 = vsyncpa [#allocation3], 1 }
 0x156   :  { %669 = vsyncpa [#allocation3 + $0x1], 1 }
 0x157   :  { %670 = vsyncpa [#allocation6], 1 }
 0x158   :  { %671 = vsyncpa [#allocation4], 1 }
 0x159   :  { %673 = vsyncpa [#allocation4 + $0x1], 1 }
 0x15a   :  { %674 = vsyncpa [#allocation9], 1 }
 0x15b   :  { %676 = vsyncpa [#allocation9 + $0x1], 1 }

</bundles_post_ra>
